<compile_context>
chip_gen: v7x
topology: tpu7x:2x2x1
jax: 0.10.0
libtpu: 0.0.40
codegen_flags: <defaults>
</compile_context>

<pallas_src>
import jax
import jax.numpy as jnp
from jax.experimental import pallas as pl
from jax.experimental.pallas import tpu as pltpu


def reduce_state_kernel(h_ref, c_ref, h_out_ref, c_out_ref):
    # Reduce over the small leading (layers*directions) axis, keepdim -> (1, TF).
    # The lane (feature) axis stays dense; the whole reduced axis is in-block.
    h_out_ref[...] = jnp.sum(h_ref[...], axis=0, keepdims=True)
    c_out_ref[...] = jnp.sum(c_ref[...], axis=0, keepdims=True)


def reduce_state_pallas(h, c, *, max_tile=4096):
    """Pallas equivalent of ReduceState.forward.

    h, c : (N, B, H) float arrays.
    returns (h_reduced, c_reduced), each of shape (1, B, H).
    """
    assert h.shape == c.shape, "h and c must share a shape"
    N, B, H = h.shape
    F = B * H

    # Lane-dense layout: flatten (B, H) -> F so the kernel streams full
    # 128-lane vectors instead of per-(batch-row) (1, H) slivers.
    h2 = h.reshape(N, F)
    c2 = c.reshape(N, F)

    # Pick the largest lane-aligned tile; for small (or non-128-divisible) F
    # take the whole array in one block (full-extent block is always legal).
    if F % 128 == 0 and F > max_tile:
        tf = max_tile
        while F % tf != 0:
            tf -= 128
        tf = max(tf, 128)
    else:
        tf = F
    grid = (pl.cdiv(F, tf),)

    out_shape = (
        jax.ShapeDtypeStruct((1, F), h.dtype),
        jax.ShapeDtypeStruct((1, F), c.dtype),
    )

    h_red, c_red = pl.pallas_call(
        reduce_state_kernel,
        out_shape=out_shape,
        grid_spec=pltpu.PrefetchScalarGridSpec(
            num_scalar_prefetch=0,
            grid=grid,
            in_specs=[
                pl.BlockSpec((N, tf), lambda i: (0, i)),   # h (flattened)
                pl.BlockSpec((N, tf), lambda i: (0, i)),   # c (flattened)
            ],
            out_specs=[
                pl.BlockSpec((1, tf), lambda i: (0, i)),   # h_reduced
                pl.BlockSpec((1, tf), lambda i: (0, i)),   # c_reduced
            ],
        ),
        compiler_params=pltpu.CompilerParams(
            # Independent feature tiles -> shard across v7x's 2 TensorCores.
            dimension_semantics=("parallel",)),
    )(h2, c2)

    return h_red.reshape(1, B, H), c_red.reshape(1, B, H)


def reduce_state_ref(h, c):
    """Pure-JAX reference mirroring the PyTorch forward."""
    return (jnp.sum(h, axis=0, keepdims=True),
            jnp.sum(c, axis=0, keepdims=True))


if __name__ == "__main__":
    # Small shapes consistent with the module: bidirectional LSTM state.
    num_directions = 2
    B = 2
    H = 32

    key = jax.random.PRNGKey(0)
    kh, kc = jax.random.split(key)
    h = jax.random.normal(kh, (num_directions, B, H), jnp.float32)
    c = jax.random.normal(kc, (num_directions, B, H), jnp.float32)

    h_red, c_red = reduce_state_pallas(h, c)
    jax.block_until_ready((h_red, c_red))

    h_ref, c_ref = reduce_state_ref(h, c)
    assert h_red.shape == (1, B, H) and c_red.shape == (1, B, H)
    assert jnp.allclose(h_red, h_ref, atol=1e-6, rtol=1e-6)
    assert jnp.allclose(c_red, c_ref, atol=1e-6, rtol=1e-6)

    print("KERNEL_OK")
</pallas_src>

<mosaic_0001>
module attributes {stable_mosaic.version = 11 : i64} {
  func.func @reduce_state_kernel(%arg0: i32, %arg1: memref<2x64xf32, #tpu.memory_space<vmem>>, %arg2: memref<2x64xf32, #tpu.memory_space<vmem>>, %arg3: memref<1x64xf32, #tpu.memory_space<vmem>>, %arg4: memref<1x64xf32, #tpu.memory_space<vmem>>) attributes {dimension_semantics = [#tpu.dimension_semantics<parallel>], iteration_bounds = array<i64: 1>, scalar_prefetch = 0 : i64, scratch_operands = 0 : i64, tpu.core_type = #tpu.core_type<tc>, window_params = [{transform_indices = @transform_0, window_bounds = array<i64: 2, 64>}, {transform_indices = @transform_1, window_bounds = array<i64: 2, 64>}, {transform_indices = @transform_2, window_bounds = array<i64: 1, 64>}, {transform_indices = @transform_3, window_bounds = array<i64: 1, 64>}]} {
    %c0 = arith.constant 0 : index
    %c0_0 = arith.constant 0 : index
    %0 = vector.load %arg1[%c0, %c0_0] : memref<2x64xf32, #tpu.memory_space<vmem>>, vector<2x64xf32>
    %cst = arith.constant dense<0.000000e+00> : vector<64xf32>
    %1 = vector.multi_reduction <add>, %0, %cst [0] : vector<2x64xf32> to vector<64xf32>
    %2 = vector.shape_cast %1 : vector<64xf32> to vector<1x64xf32>
    %c0_1 = arith.constant 0 : index
    %c0_2 = arith.constant 0 : index
    %3 = vector.load %arg3[%c0_1, %c0_2] : memref<1x64xf32, #tpu.memory_space<vmem>>, vector<1x64xf32>
    tpu.vector_store %arg3[%c0_1, %c0_2], %2 {strides = array<i32>} : memref<1x64xf32, #tpu.memory_space<vmem>>, vector<1x64xf32>,
    %c0_3 = arith.constant 0 : index
    %c0_4 = arith.constant 0 : index
    %4 = vector.load %arg2[%c0_3, %c0_4] : memref<2x64xf32, #tpu.memory_space<vmem>>, vector<2x64xf32>
    %cst_5 = arith.constant dense<0.000000e+00> : vector<64xf32>
    %5 = vector.multi_reduction <add>, %4, %cst_5 [0] : vector<2x64xf32> to vector<64xf32>
    %6 = vector.shape_cast %5 : vector<64xf32> to vector<1x64xf32>
    %c0_6 = arith.constant 0 : index
    %c0_7 = arith.constant 0 : index
    %7 = vector.load %arg4[%c0_6, %c0_7] : memref<1x64xf32, #tpu.memory_space<vmem>>, vector<1x64xf32>
    tpu.vector_store %arg4[%c0_6, %c0_7], %6 {strides = array<i32>} : memref<1x64xf32, #tpu.memory_space<vmem>>, vector<1x64xf32>,
    return
  }
  func.func @transform_0(%arg0: i32) -> (i32, i32) {
    %c0_i32 = arith.constant 0 : i32
    %c0_i32_0 = arith.constant 0 : i32
    return %c0_i32, %arg0 : i32, i32
  }
  func.func @transform_1(%arg0: i32) -> (i32, i32) {
    %c0_i32 = arith.constant 0 : i32
    %c0_i32_0 = arith.constant 0 : i32
    return %c0_i32, %arg0 : i32, i32
  }
  func.func @transform_2(%arg0: i32) -> (i32, i32) {
    %c0_i32 = arith.constant 0 : i32
    %c0_i32_0 = arith.constant 0 : i32
    return %c0_i32, %arg0 : i32, i32
  }
  func.func @transform_3(%arg0: i32) -> (i32, i32) {
    %c0_i32 = arith.constant 0 : i32
    %c0_i32_0 = arith.constant 0 : i32
    return %c0_i32, %arg0 : i32, i32
  }
}

</mosaic_0001>

<bundles_post_ra>
// kernel: tpu_custom_call.1
= control target key start
LH: loop header
LB: loop body
LE: loop exit
PB: predicated region body
PF: predicated region fallthrough
CT: control target
= control target key end

     0   :  { %9 = vsyncpa [#allocation3], 0  ;;  %s221_s0 = inlined_call_operand.hbm [shape: f32[2,64], index: 0, kind: input, shape index: {}]   ;;  %s222_s1 = inlined_call_operand.vmem [shape: f32[2,64], index: 1, kind: input, shape index: {}]   ;;  %s223_s2 = inlined_call_operand.hbm [shape: f32[1,64], index: 2, kind: output, shape index: {0}]   ;;  %s224_s3 = inlined_call_operand.hbm [shape: f32[1,64], index: 3, kind: output, shape index: {1}]  }
   0x1   :  { %10 = vsyncpa [#allocation4], 0 }
   0x2   :  { %11 = vsyncpa [#allocation7], 0  ;;  %s151_s12 = smov [#allocation2]   ;;  %s79_s16 = scalar_lea.hbm %s221_s0, 32 }
   0x3   :  { %s18_s13 = sshll.u32 %s151_s12, 4  ;;  %p80_p0 = scmp.ne.s32.totalorder %s221_s0, %s79_s16  ;;  %s19_s13 = int_to_ptr.vmem [resolvable:$true] %s18_s13 }
   0x4   :  { %p83_p1 = scmp.lt.u32.totalorder %s79_s16, %s221_s0 }
   0x6   :  { %p85_p2 = pnand %p83_p1, %p80_p0 }
   0x8   :  { %88 = shalt.err (!%p85_p2)
}
   0x9   :  { %s89_s21 = scalar_lea.vmem %s19_s13, 32  ;;  %p94_p4 = scmp.lt.s32.totalorder %s19_s13, %s19_s13 }
   0xa   :  { %p90_p3 = scmp.ne.s32.totalorder %s19_s13, %s89_s21  ;;  %p95_p5 = scmp.lt.s32.totalorder %s89_s21, %s89_s21 }
   0xc   :  { %p96_p6 = por %p95_p5, %p94_p4 }
   0xe   :  { %p97_p7 = pnand %p96_p6, %p90_p3 }
  0x10   :  { %100 = shalt.err (!%p97_p7)
}
  0x11   :  { %21 = dma.hbm_to_vmem [thread:$0]  %s221_s0, 32, %s19_s13, [#allocation3]  }
  0x12   :  { %145 = dma.done.wait [#allocation3], 32  }
  0x13   :  { %146 = vsyncadd [#allocation3], 4294967264  ;;  %vm28_vm0 = vcmask 517120   ;;  %v27_v0 = vld [vmem:[#allocation2] sm:$0x3]  ;;  %s152_s26 = smov [#allocation5]  }
  0x14   :  { %v38_v1 = vld [vmem:[%s222_s1] sm:$0x3]  ;;  %v29_v2 = vsel %vm28_vm0, %v27_v0, 0.0  ;;  %s53_s0 = sshll.u32 %s152_s26, 4  ;;  %s153_s27 = smov [#allocation6]   ;;  %vm36_vm1 = vcmask 516096   ;;  %s54_s0 = int_to_ptr.vmem [resolvable:$true] %s53_s0 }
  0x15   :  { %v39_v3 = vsel %vm28_vm0, %v38_v1, 0.0  ;;  %v30_v4 = vrot.slane %v29_v2, 4  ;;  %s63_s28 = sshll.u32 %s153_s27, 4  ;;  %s101_s1 = scalar_lea.vmem %s54_s0, 16  ;;  %s189_s28 = int_to_ptr.vmem [resolvable:$true] %s63_s28 }
  0x16   :  { %v40_v5 = vrot.slane %v39_v3, 4  ;;  %p102_p8 = scmp.ne.s32.totalorder %s54_s0, %s101_s1  ;;  %s105_s29 = scalar_lea.vmem %s54_s0, 32 }
  0x17   :  { %v31_v6 = vadd.f32 %v30_v4, %v29_v2  ;;  %p106_p9 = scmp.lt.s32.totalorder %s54_s0, %s54_s0  ;;  %p107_p10 = scmp.lt.s32.totalorder %s105_s29, %s101_s1 }
  0x18   :  { %v41_v7 = vadd.f32 %v40_v5, %v39_v3 }
  0x19   :  { %v32_v8 = vrot.slane %v31_v6, 2  ;;  %p108_p11 = por %p107_p10, %p106_p9 }
  0x1a   :  { %v42_v9 = vrot.slane %v41_v7, 2 }
  0x1b   :  { %v33_v10 = vadd.f32 %v32_v8, %v31_v6  ;;  %p109_p12 = pnand %p108_p11, %p102_p8 }
  0x1c   :  { %v43_v11 = vadd.f32 %v42_v9, %v41_v7 }
  0x1d   :  { %v34_v12 = vrot.slane %v33_v10, 1 }
  0x1e   :  { %v44_v13 = vrot.slane %v43_v11, 1 }
  0x1f   :  { %v35_v14 = vadd.f32 %v34_v12, %v33_v10 }
  0x20   :  { %v45_v15 = vadd.f32 %v44_v13, %v43_v11 }
  0x21   :  { %37 = vst.msk [vmem:[#allocation5] sm:$0x1] %vm36_vm1, %v35_v14 }
  0x22   :  { %46 = vst.msk [vmem:[#allocation6] sm:$0x1] %vm36_vm1, %v45_v15 }
  0x23   :  { %112 = shalt.err (!%p109_p12)
}
  0x24   :  { %s113_s5 = scalar_lea.hbm %s223_s2, 16 }
  0x25   :  { %p114_p13 = scmp.ne.s32.totalorder %s223_s2, %s113_s5  ;;  %p117_p0 = scmp.lt.u32.totalorder %s113_s5, %s223_s2 }
  0x27   :  { %p119_p1 = pnand %p117_p0, %p114_p13 }
  0x29   :  { %122 = shalt.err (!%p119_p1)
}
  0x2a   :  { %56 = dma.vmem_to_hbm [thread:$0]  %s54_s0, 16, %s223_s2, [#allocation4]  }
  0x2b   :  { %s123_s12 = scalar_lea.vmem %s189_s28, 16  ;;  %s127_s13 = scalar_lea.vmem %s189_s28, 32 }
  0x2c   :  { %p124_p2 = scmp.ne.s32.totalorder %s189_s28, %s123_s12  ;;  %p128_p3 = scmp.lt.s32.totalorder %s189_s28, %s189_s28 }
  0x2d   :  { %p129_p4 = scmp.lt.s32.totalorder %s127_s13, %s123_s12 }
  0x2f   :  { %p130_p5 = por %p129_p4, %p128_p3 }
  0x31   :  { %p131_p6 = pnand %p130_p5, %p124_p2 }
  0x33   :  { %134 = shalt.err (!%p131_p6)
}
  0x34   :  { %s135_s16 = scalar_lea.hbm %s224_s3, 16 }
  0x35   :  { %p136_p7 = scmp.ne.s32.totalorder %s224_s3, %s135_s16  ;;  %p139_p8 = scmp.lt.u32.totalorder %s135_s16, %s224_s3 }
  0x37   :  { %p141_p9 = pnand %p139_p8, %p136_p7 }
  0x39   :  { %144 = shalt.err (!%p141_p9)
}
  0x3a   :  { %66 = dma.vmem_to_hbm [thread:$0]  %s189_s28, 16, %s224_s3, [#allocation7]  }
  0x3b   :  { %147 = dma.done.wait [#allocation4], 16  }
  0x3c   :  { %148 = vsyncadd [#allocation4], 4294967280 }
  0x3d   :  { %149 = dma.done.wait [#allocation7], 16  }
  0x3e   :  { %150 = vsyncadd [#allocation7], 4294967280 }
  0x3f   :  { %73 = vsyncpa [#allocation3], 1 }
  0x40   :  { %74 = vsyncpa [#allocation4], 1 }
  0x41   :  { %75 = vsyncpa [#allocation7], 1 }

</bundles_post_ra>
